<compile_context>
chip_gen: v7x
topology: tpu7x:2x2x1
jax: 0.10.0
libtpu: 0.0.40
codegen_flags: <defaults>
</compile_context>

<pallas_src>
import jax
import jax.numpy as jnp
from jax import lax
from jax.experimental import pallas as pl
from jax.experimental.pallas import tpu as pltpu


# Contract dim 1 of lhs with dim 1 of rhs:  (B, H) x (C, H) -> (B, C)  ==  A @ B.T
_CONTRACT_LAST = (((1,), (1,)), ((), ()))


def _head_kernel_bidir(h_fwd_ref, h_bwd_ref, w_ref, b_ref, o_ref):
    # h_fwd_ref, h_bwd_ref : (tile_B, H)   last-layer forward / backward hidden states
    # w_ref                : (C, 2H)       un-transposed nn.Linear weight
    # b_ref                : (1, C)
    # o_ref                : (tile_B, C)   log-softmax scores
    H = h_fwd_ref.shape[1]
    w = w_ref[...]
    # logits = [h_fwd | h_bwd] @ W.T + b, computed as two half-contractions so neither
    # the activations nor the weight need any layout plumbing outside the kernel.
    logits = lax.dot_general(h_fwd_ref[...], w[:, :H], _CONTRACT_LAST,
                             preferred_element_type=jnp.float32)
    logits = logits + lax.dot_general(h_bwd_ref[...], w[:, H:], _CONTRACT_LAST,
                                      preferred_element_type=jnp.float32)
    logits = logits + b_ref[...]
    # numerically-stable log_softmax over classes (dim=1)
    m = jnp.max(logits, axis=-1, keepdims=True)
    shifted = logits - m
    lse = jnp.log(jnp.sum(jnp.exp(shifted), axis=-1, keepdims=True))
    o_ref[...] = (shifted - lse).astype(o_ref.dtype)


def _head_kernel_unidir(h_ref, w_ref, b_ref, o_ref):
    # h_ref : (tile_B, H),  w_ref : (C, H),  b_ref : (1, C),  o_ref : (tile_B, C)
    logits = lax.dot_general(h_ref[...], w_ref[...], _CONTRACT_LAST,
                             preferred_element_type=jnp.float32)
    logits = logits + b_ref[...]
    m = jnp.max(logits, axis=-1, keepdims=True)
    shifted = logits - m
    lse = jnp.log(jnp.sum(jnp.exp(shifted), axis=-1, keepdims=True))
    o_ref[...] = (shifted - lse).astype(o_ref.dtype)


def snt_classifier_2tails_forward(h_t_all, weight, bias, *, num_layers=1,
                                  bidirectional=True, batch_tile=512):
    """Forward pass equivalent to sntClassifier_2tails.forward (multi_class=False).

    h_t_all : (num_layers * num_directions, batch, hidden_dim)  -- packed_h_t_c_t[0]
    weight  : (class_size, num_directions * hidden_dim)         -- nn.Linear weight
    bias    : (class_size,)                                     -- nn.Linear bias
    returns : (batch, class_size) log-softmax scores, float32
    """
    num_directions = 2 if bidirectional else 1
    _, B, H = h_t_all.shape
    C, D = weight.shape
    assert D == num_directions * H

    # TODO(synk): training-mode dropout (p>0) and the multi_class sigmoid +
    # masked_output index_fill_ branch are not implemented (eval, multi_class=False only).

    # Free metadata-only reshape (no HBM copy); everything else is fused in the kernel.
    b2d = bias.reshape(1, C)

    # Batch tiling: one tile for small B, 512-row tiles otherwise (per-step overhead
    # ~0.35us; 512-row tiles sit near the HBM roofline and fit well under the v7x
    # 64 MiB VMEM budget with double-buffering at realistic H).
    tile_b = B if B <= batch_tile else batch_tile
    grid = (pl.cdiv(B, tile_b),)
    vmem = pltpu.MemorySpace.VMEM

    # Weight / bias block indices are constant across the grid -> DMA'd once,
    # kept VMEM-resident across all batch tiles.
    w_spec = pl.BlockSpec((C, D), lambda i: (0, 0), memory_space=vmem)
    b_spec = pl.BlockSpec((1, C), lambda i: (0, 0), memory_space=vmem)
    out_spec = pl.BlockSpec((tile_b, C), lambda i: (i, 0), memory_space=vmem)

    compiler_params = pltpu.CompilerParams(
        dimension_semantics=("parallel",))  # shards batch tiles across TCs on v7x

    if bidirectional:
        idx_fwd = num_layers * 2 - 2
        idx_bwd = num_layers * 2 - 1
        # Squeezed leading dim: index_map picks the direction slice directly from HBM
        # (replaces torch.index_select + transpose + contiguous().view in the wrapper).
        h_fwd_spec = pl.BlockSpec((None, tile_b, H), lambda i: (idx_fwd, i, 0),
                                  memory_space=vmem)
        h_bwd_spec = pl.BlockSpec((None, tile_b, H), lambda i: (idx_bwd, i, 0),
                                  memory_space=vmem)
        return pl.pallas_call(
            _head_kernel_bidir,
            out_shape=jax.ShapeDtypeStruct((B, C), jnp.float32),
            grid=grid,
            in_specs=[h_fwd_spec, h_bwd_spec, w_spec, b_spec],
            out_specs=out_spec,
            compiler_params=compiler_params,
        )(h_t_all, h_t_all, weight, b2d)
    else:
        idx = num_layers - 1
        h_spec = pl.BlockSpec((None, tile_b, H), lambda i: (idx, i, 0),
                              memory_space=vmem)
        return pl.pallas_call(
            _head_kernel_unidir,
            out_shape=jax.ShapeDtypeStruct((B, C), jnp.float32),
            grid=grid,
            in_specs=[h_spec, w_spec, b_spec],
            out_specs=out_spec,
            compiler_params=compiler_params,
        )(h_t_all, weight, b2d)


def _reference_forward(h_t_all, weight, bias, *, num_layers=1, bidirectional=True):
    idx = [num_layers * 2 - 2, num_layers * 2 - 1] if bidirectional else [num_layers - 1]
    h_t = h_t_all[jnp.asarray(idx)]
    h_t = jnp.transpose(h_t, (1, 0, 2)).reshape(h_t.shape[1], -1)
    logits = h_t @ weight.T + bias
    return jax.nn.log_softmax(logits, axis=1)


if __name__ == "__main__":
    # Small shapes implied by the module:
    #   hidden_dim=32, class_size=16, batch=8, bidirectional -> num_directions=2
    hidden_dim = 32
    class_size = 16
    batch = 8
    num_layers = 1
    num_directions = 2

    key = jax.random.PRNGKey(0)
    k_h, k_w, k_b = jax.random.split(key, 3)

    # packed_h_t_c_t[0]: (num_layers*num_directions, batch, hidden_dim)
    h_t_all = jax.random.normal(k_h, (num_layers * num_directions, batch, hidden_dim),
                                dtype=jnp.float32)

    # init_weights(initrange=0.2): uniform(-0.2, 0.2) on Linear params
    initrange = 0.2
    weight = jax.random.uniform(k_w, (class_size, num_directions * hidden_dim),
                                minval=-initrange, maxval=initrange, dtype=jnp.float32)
    bias = jax.random.uniform(k_b, (class_size,),
                              minval=-initrange, maxval=initrange, dtype=jnp.float32)

    out = snt_classifier_2tails_forward(h_t_all, weight, bias,
                                        num_layers=num_layers, bidirectional=True)
    out = jax.block_until_ready(out)

    ref = _reference_forward(h_t_all, weight, bias,
                             num_layers=num_layers, bidirectional=True)
    assert out.shape == (batch, class_size)
    assert jnp.allclose(out, ref, atol=1e-5, rtol=1e-5), "mismatch vs reference"

    print("KERNEL_OK")
</pallas_src>

<mosaic_0001>
module attributes {stable_mosaic.version = 11 : i64} {
  func.func @_head_kernel_bidir(%arg0: i32, %arg1: memref<1x8x32xf32, #tpu.memory_space<vmem>>, %arg2: memref<1x8x32xf32, #tpu.memory_space<vmem>>, %arg3: memref<16x64xf32, #tpu.memory_space<vmem>>, %arg4: memref<1x16xf32, #tpu.memory_space<vmem>>, %arg5: memref<8x16xf32, #tpu.memory_space<vmem>>) attributes {dimension_semantics = [#tpu.dimension_semantics<parallel>], iteration_bounds = array<i64: 1>, scalar_prefetch = 0 : i64, scratch_operands = 0 : i64, tpu.core_type = #tpu.core_type<tc>, window_params = [{transform_indices = @transform_0, window_bounds = array<i64: 1, 8, 32>}, {transform_indices = @transform_1, window_bounds = array<i64: 1, 8, 32>}, {pipeline_mode = #tpu.pipeline_mode<synchronous>, transform_indices = @transform_2, window_bounds = array<i64: 16, 64>}, {pipeline_mode = #tpu.pipeline_mode<synchronous>, transform_indices = @transform_3, window_bounds = array<i64: 1, 16>}, {transform_indices = @transform_4, window_bounds = array<i64: 8, 16>}]} {
    %c0 = arith.constant 0 : index
    %c0_0 = arith.constant 0 : index
    %0 = vector.load %arg3[%c0, %c0_0] : memref<16x64xf32, #tpu.memory_space<vmem>>, vector<16x64xf32>
    %c0_1 = arith.constant 0 : index
    %c0_2 = arith.constant 0 : index
    %c0_3 = arith.constant 0 : index
    %1 = vector.load %arg1[%c0_1, %c0_2, %c0_3] : memref<1x8x32xf32, #tpu.memory_space<vmem>>, vector<1x8x32xf32>
    %2 = vector.shape_cast %1 : vector<1x8x32xf32> to vector<8x32xf32>
    %3 = vector.extract_strided_slice %0 {offsets = [0, 0], sizes = [16, 32], strides = [1, 1]} : vector<16x64xf32> to vector<16x32xf32>
    %cst = arith.constant dense<0.000000e+00> : vector<8x16xf32>
    %4 = tpu.matmul %2, %3, %cst {dimension_numbers = #tpu.dot_dimension_numbers<[1], [1], [0], [0], [0, 0, 1, 0], [], []>} : vector<8x32xf32>, vector<16x32xf32>, vector<8x16xf32> -> vector<8x16xf32>
    %c0_4 = arith.constant 0 : index
    %c0_5 = arith.constant 0 : index
    %c0_6 = arith.constant 0 : index
    %5 = vector.load %arg2[%c0_4, %c0_5, %c0_6] : memref<1x8x32xf32, #tpu.memory_space<vmem>>, vector<1x8x32xf32>
    %6 = vector.shape_cast %5 : vector<1x8x32xf32> to vector<8x32xf32>
    %7 = vector.extract_strided_slice %0 {offsets = [0, 32], sizes = [16, 32], strides = [1, 1]} : vector<16x64xf32> to vector<16x32xf32>
    %cst_7 = arith.constant dense<0.000000e+00> : vector<8x16xf32>
    %8 = tpu.matmul %6, %7, %cst_7 {dimension_numbers = #tpu.dot_dimension_numbers<[1], [1], [0], [0], [0, 0, 1, 0], [], []>} : vector<8x32xf32>, vector<16x32xf32>, vector<8x16xf32> -> vector<8x16xf32>
    %9 = arith.addf %4, %8 : vector<8x16xf32>
    %c0_8 = arith.constant 0 : index
    %c0_9 = arith.constant 0 : index
    %10 = vector.load %arg4[%c0_8, %c0_9] : memref<1x16xf32, #tpu.memory_space<vmem>>, vector<1x16xf32>
    %11 = vector.broadcast %10 : vector<1x16xf32> to vector<8x16xf32>
    %12 = arith.addf %9, %11 : vector<8x16xf32>
    %cst_10 = arith.constant dense<0xFF800000> : vector<8xf32>
    %13 = vector.multi_reduction <maximumf>, %12, %cst_10 [1] : vector<8x16xf32> to vector<8xf32>
    %14 = vector.shape_cast %13 : vector<8xf32> to vector<8x1xf32>
    %15 = vector.broadcast %14 : vector<8x1xf32> to vector<8x16xf32>
    %16 = arith.subf %12, %15 : vector<8x16xf32>
    %17 = math.exp %16 : vector<8x16xf32>
    %cst_11 = arith.constant dense<0.000000e+00> : vector<8xf32>
    %18 = vector.multi_reduction <add>, %17, %cst_11 [1] : vector<8x16xf32> to vector<8xf32>
    %19 = vector.shape_cast %18 : vector<8xf32> to vector<8x1xf32>
    %20 = math.log %19 : vector<8x1xf32>
    %21 = vector.broadcast %20 : vector<8x1xf32> to vector<8x16xf32>
    %22 = arith.subf %16, %21 : vector<8x16xf32>
    %c0_12 = arith.constant 0 : index
    %c0_13 = arith.constant 0 : index
    %23 = vector.load %arg5[%c0_12, %c0_13] : memref<8x16xf32, #tpu.memory_space<vmem>>, vector<8x16xf32>
    tpu.vector_store %arg5[%c0_12, %c0_13], %22 {strides = array<i32>} : memref<8x16xf32, #tpu.memory_space<vmem>>, vector<8x16xf32>,
    return
  }
  func.func @transform_0(%arg0: i32) -> (i32, i32, i32) {
    %c0_i32 = arith.constant 0 : i32
    %c0_i32_0 = arith.constant 0 : i32
    %c0_i32_1 = arith.constant 0 : i32
    return %c0_i32, %arg0, %c0_i32_0 : i32, i32, i32
  }
  func.func @transform_1(%arg0: i32) -> (i32, i32, i32) {
    %c1_i32 = arith.constant 1 : i32
    %c0_i32 = arith.constant 0 : i32
    %c0_i32_0 = arith.constant 0 : i32
    return %c1_i32, %arg0, %c0_i32 : i32, i32, i32
  }
  func.func @transform_2(%arg0: i32) -> (i32, i32) {
    %c0_i32 = arith.constant 0 : i32
    %c0_i32_0 = arith.constant 0 : i32
    %c0_i32_1 = arith.constant 0 : i32
    return %c0_i32, %c0_i32_0 : i32, i32
  }
  func.func @transform_3(%arg0: i32) -> (i32, i32) {
    %c0_i32 = arith.constant 0 : i32
    %c0_i32_0 = arith.constant 0 : i32
    %c0_i32_1 = arith.constant 0 : i32
    return %c0_i32, %c0_i32_0 : i32, i32
  }
  func.func @transform_4(%arg0: i32) -> (i32, i32) {
    %c0_i32 = arith.constant 0 : i32
    %c0_i32_0 = arith.constant 0 : i32
    return %arg0, %c0_i32 : i32, i32
  }
}

</mosaic_0001>

<bundles_post_ra>
// kernel: tpu_custom_call.1
= control target key start
LH: loop header
LB: loop body
LE: loop exit
PB: predicated region body
PF: predicated region fallthrough
CT: control target
= control target key end

     0   :  { %9 = vsyncpa [#allocation3], 0  ;;  %s503_s0 = inlined_call_operand.hbm [shape: f32[2,8,32], index: 0, kind: input, shape index: {}]   ;;  %s504_s1 = inlined_call_operand.hbm [shape: f32[2,8,32], index: 1, kind: input, shape index: {}]   ;;  %s505_s2 = inlined_call_operand.hbm [shape: f32[16,64], index: 2, kind: input, shape index: {}]   ;;  %s506_s3 = inlined_call_operand.vmem [shape: f32[1,16], index: 3, kind: input, shape index: {}]   ;;  %s507_s4 = inlined_call_operand.hbm [shape: f32[8,16], index: 4, kind: output, shape index: {}]  }
   0x1   :  { %10 = vsyncpa [#allocation6], 0  ;;  %s27_s17 = scalar_lea.hbm %s504_s1, 128 }
   0x2   :  { %11 = vsyncpa [#allocation4], 0  ;;  %s410_s18 = smov [#allocation5]   ;;  %s411_s20 = smov [#allocation2]  }
   0x3   :  { %s29_s19 = sshll.u32 %s410_s18, 4  ;;  %s18_s21 = sshll.u32 %s411_s20, 4  ;;  %s30_s19 = int_to_ptr.vmem [resolvable:$true] %s29_s19  ;;  %s19_s21 = int_to_ptr.vmem [resolvable:$true] %s18_s21 }
   0x4   :  { %s337_s24 = scalar_lea.hbm %s504_s1, 256  ;;  %p316_p1 = scmp.lt.u32.totalorder %s27_s17, %s504_s1 }
   0x5   :  { %p314_p0 = scmp.ne.s32.totalorder %s27_s17, %s337_s24  ;;  %p317_p2 = scmp.lt.u32.totalorder %s337_s24, %s337_s24 }
   0x6   :  { %p319_p4 = scmp.lt.u32.totalorder %s337_s24, %s27_s17 }
   0x7   :  { %p318_p3 = por %p317_p2, %p316_p1 }
   0x9   :  { %p320_p5 = por %p319_p4, %p318_p3 }
   0xb   :  { %p321_p6 = pnand %p320_p5, %p314_p0 }
   0xd   :  { %324 = shalt.err (!%p321_p6)
}
   0xe   :  { %s325_s27 = scalar_lea.vmem %s30_s19, 128  ;;  %p330_p8 = scmp.lt.s32.totalorder %s30_s19, %s30_s19 }
   0xf   :  { %p326_p7 = scmp.ne.s32.totalorder %s30_s19, %s325_s27  ;;  %p331_p9 = scmp.lt.s32.totalorder %s325_s27, %s325_s27 }
  0x11   :  { %p332_p10 = por %p331_p9, %p330_p8 }
  0x13   :  { %p333_p11 = pnand %p332_p10, %p326_p7 }
  0x15   :  { %336 = shalt.err (!%p333_p11)
}
  0x16   :  { %32 = dma.hbm_to_vmem [thread:$0]  %s27_s17, 128, %s30_s19, [#allocation6]  }
  0x17   :  { %s338_s30 = scalar_lea.hbm %s503_s0, 128  ;;  %s340_s8 = scalar_lea.hbm %s503_s0, 256 }
  0x18   :  { %p339_p12 = scmp.ne.s32.totalorder %s503_s0, %s338_s30  ;;  %p341_p13 = scmp.lt.u32.totalorder %s340_s8, %s338_s30 }
  0x19   :  { %p342_p0 = scmp.lt.u32.totalorder %s338_s30, %s503_s0 }
  0x1b   :  { %p343_p1 = por %p342_p0, %p341_p13 }
  0x1d   :  { %p344_p2 = pnand %p343_p1, %p339_p12 }
  0x1f   :  { %347 = shalt.err (!%p344_p2)
}
  0x20   :  { %s348_s11 = scalar_lea.vmem %s19_s21, 128  ;;  %p353_p4 = scmp.lt.s32.totalorder %s19_s21, %s19_s21 }
  0x21   :  { %p349_p3 = scmp.ne.s32.totalorder %s19_s21, %s348_s11  ;;  %p354_p5 = scmp.lt.s32.totalorder %s348_s11, %s348_s11 }
  0x23   :  { %p355_p6 = por %p354_p5, %p353_p4 }
  0x25   :  { %p356_p7 = pnand %p355_p6, %p349_p3 }
  0x27   :  { %359 = shalt.err (!%p356_p7)
}
  0x28   :  { %21 = dma.hbm_to_vmem [thread:$0]  %s503_s0, 128, %s19_s21, [#allocation3]  }
  0x29   :  { %s412_s14 = smov [#allocation7]   ;;  %s360_s18 = scalar_lea.hbm %s505_s2, 256 }
  0x2a   :  { %s38_s15 = sshll.u32 %s412_s14, 4  ;;  %p361_p8 = scmp.ne.s32.totalorder %s505_s2, %s360_s18  ;;  %s39_s15 = int_to_ptr.vmem [resolvable:$true] %s38_s15 }
  0x2b   :  { %p364_p9 = scmp.lt.u32.totalorder %s360_s18, %s505_s2 }
  0x2d   :  { %p366_p10 = pnand %p364_p9, %p361_p8 }
  0x2f   :  { %369 = shalt.err (!%p366_p10)
}
  0x30   :  { %s370_s24 = scalar_lea.vmem %s39_s15, 256  ;;  %p375_p12 = scmp.lt.s32.totalorder %s39_s15, %s39_s15 }
  0x31   :  { %p371_p11 = scmp.ne.s32.totalorder %s39_s15, %s370_s24  ;;  %p376_p13 = scmp.lt.s32.totalorder %s370_s24, %s370_s24 }
  0x33   :  { %p377_p0 = por %p376_p13, %p375_p12 }
  0x35   :  { %p378_p1 = pnand %p377_p0, %p371_p11 }
  0x37   :  { %381 = shalt.err (!%p378_p1)
}
  0x38   :  { %s413_s0 = smov 128   ;;  %s414_s21 = smov 8  }
  0x39   :  { %44 = dma.hbm_to_vmem [thread:$0]  %s505_s2, 256, %s39_s15, [#allocation6], %s413_s0, %s413_s0, %s414_s21  }
  0x3a   :  { %404 = dma.done.wait [#allocation3], 128  }
  0x3b   :  { %405 = vsyncadd [#allocation3], 4294967168 }
  0x3c   :  { %406 = dma.done.wait [#allocation6], 384  }
  0x3d   :  { %407 = vsyncadd [#allocation6], 4294966912  ;;  %v415_v0 = vmov 0.0|0.0   ;;  %vm416_vm0 = vmmov 0   ;;  %v417_v1 = vmov 0.0   ;;  %vm66_vm1 = vcmask 261120  }
  0x3e   :  { %290 = vmatprep.subr.bf16.mxu1 %v415_v0  ;;  %286 = vmatprep.subr.bf16.mxu0 %v415_v0  ;;  %v56_v2 = vld [vmem:[#allocation7] sm:$0xff]  ;;  %v57_v3 = vld [vmem:[#allocation7 + $0x8] sm:$0xff]  ;;  %vm288_vm2 = vmpackc.low %vm66_vm1, %vm66_vm1  ;;  %s418_s2 = smov 96   ;;  %vm229_vm3 = vcmask 130048   ;;  %s419_s29 = smov [#allocation8]  }
  0x3f   :  { %283 = vmatprep.mubr.msk.f32.mxu1 %vm416_vm0, %v417_v1  ;;  %276 = vmatprep.mubr.msk.f32.mxu0 %vm416_vm0, %v417_v1  ;;  %v304_v4 = vpack.i.bf16 %v57_v3, %v56_v2  ;;  %v291_v5 = vpack.c.bf16 %v57_v3, %v56_v2  ;;  %v58_v6 = vld [vmem:[#allocation2] sm:$0xff]  ;;  %v59_v11 = vld [vmem:[#allocation5] sm:$0xff] }
  0x40   :  { %v265_v15 = vld [vmem:[%s506_s3] ss:$0 sm:$0xff]  ;;  %s249_s3 = sshll.u32 %s419_s29, 4  ;;  %s250_s3 = int_to_ptr.vmem [resolvable:$true] %s249_s3 }
  0x41   :  { %305 = vrot.lane.b32.xlu0 %v304_v4, %s418_s2  ;;  %293 = vmatpush3.bf16.xpose.msk.msra.mxu1 %vm288_vm2, %v291_v5  ;;  %s382_s30 = scalar_lea.vmem %s250_s3, 128  ;;  %p387_p3 = scmp.lt.s32.totalorder %s250_s3, %s250_s3 }
  0x42   :  { %p383_p2 = scmp.ne.s32.totalorder %s250_s3, %s382_s30  ;;  %p388_p4 = scmp.lt.s32.totalorder %s382_s30, %s382_s30 }
  0x44   :  { %p389_p5 = por %p388_p4, %p387_p3 }
  0x46   :  { %p390_p6 = pnand %p389_p5, %p383_p2 }
  0x48   :  { %284 = vmatmul.mubr.msk.f32.vlgmr.msra.gmra.mrb[0].mxu1 %vm66_vm1, %v58_v6 }
  0xb3   :  { %v306_v7 = vpop.permute.xlu0 %305 }
  0xb4   :  { %v308_v8 = vunpack.i.h.bf16 %v306_v7  ;;  %v307_v9 = vunpack.i.l.bf16 %v306_v7 }
  0xb6   :  { %v287_v10 = vpack.c.bf16 %v308_v8, %v307_v9 }
  0xb8   :  { %289 = vmatpush3.bf16.xpose.msk.msra.mxu0 %vm288_vm2, %v287_v10 }
  0xbf   :  { %277 = vmatmul.mubr.msk.f32.vlgmr.msra.gmra.mrb[0].mxu0 %vm66_vm1, %v59_v11 }
 0x11b   :  { %v217_v12 = vpop.f32.mrb[0].mxu1 }
 0x11c   :  { %v285_v13 = vpop.f32.mrb[1].mxu1 }
 0x192   :  { %v140_v14 = vpop.f32.mrb[0].mxu0 }
 0x193   :  { %v218_v16 = vadd.f32 %v217_v12, %v140_v14  ;;  %v278_v17 = vpop.f32.mrb[1].mxu0 }
 0x195   :  { %v228_v18 = vadd.f32 %v265_v15, %v218_v16 }
 0x197   :  { %v230_v19 = vsel %vm229_vm3, %v228_v18, -inf }
 0x198   :  { %231 = vmax.xlane.f32.xlu0 %v230_v19 }
 0x225   :  { %v232_v20 = vpop.xlane.xlu0 %231 }
 0x226   :  { %v233_v21 = vsub.f32 %v228_v18, %v232_v20 }
 0x228   :  { %v234_v22 = vmul.f32 1.442695, %v233_v21 }
 0x22a   :  { %309 = vpow2.f32 %v234_v22 }
 0x234   :  { %v310_v23 = vpop.eup %309 }
 0x235   :  { %v236_v24 = vsel %vm229_vm3, %v310_v23, 0.0 }
 0x236   :  { %237 = vadd.xlane.f32.xlu1 %v236_v24 }
 0x2c3   :  { %v238_v25 = vpop.xlane.xlu1 %237 }
 0x2c4   :  { %311 = vlog2.f32 %v238_v25 }
 0x2ce   :  { %v312_v26 = vpop.eup %311 }
 0x2cf   :  { %v240_v27 = vmul.f32 0.6931472, %v312_v26 }
 0x2d1   :  { %v241_v28 = vsub.f32 %v233_v21, %v240_v27 }
 0x2d3   :  { %242 = vst.msk [vmem:[#allocation8] sm:$0xff] %vm229_vm3, %v241_v28 }
 0x2d4   :  { %393 = shalt.err (!%p390_p6)
}
 0x2d5   :  { %s394_s6 = scalar_lea.hbm %s507_s4, 128 }
 0x2d6   :  { %p395_p7 = scmp.ne.s32.totalorder %s507_s4, %s394_s6  ;;  %p398_p8 = scmp.lt.u32.totalorder %s394_s6, %s507_s4 }
 0x2d8   :  { %p400_p9 = pnand %p398_p8, %p395_p7 }
 0x2da   :  { %403 = shalt.err (!%p400_p9)
}
 0x2db   :  { %252 = dma.vmem_to_hbm [thread:$0]  %s250_s3, 128, %s507_s4, [#allocation4]  }
 0x2dc   :  { %408 = dma.done.wait [#allocation4], 128  }
 0x2dd   :  { %409 = vsyncadd [#allocation4], 4294967168 }
 0x2de   :  { %256 = vsyncpa [#allocation3], 1 }
 0x2df   :  { %257 = vsyncpa [#allocation6], 1 }
 0x2e0   :  { %258 = vsyncpa [#allocation4], 1 }

</bundles_post_ra>
